<compile_context>
chip_gen: v5e
topology: v5e:2x2
jax: 0.10.0
libtpu: 0.0.40
codegen_flags: <defaults>
</compile_context>

<pallas_src>
import jax
import jax.numpy as jnp
from jax.experimental import pallas as pl
from jax.experimental.pallas import tpu as pltpu


def _round_up(n, m):
    return ((n + m - 1) // m) * m


def _cdiv(a, b):
    return (a + b - 1) // b


def _num_tensorcores():
    """Best-effort TensorCores-per-chip (v7x has 2; v5e/v6e have 1)."""
    try:
        kind = jax.devices()[0].device_kind.lower()
    except Exception:
        return 1
    return 2 if ("v7" in kind or "7x" in kind) else 1


def critic_kernel(x_ref, a_ref, w1x_ref, w1a_ref, b1_ref, w2_ref, b2_ref,
                  w3_ref, b3_ref, w4row_ref, b4_ref, o_ref):
    # MXU operand dtype follows weight storage (bf16 by default, f32 fallback).
    mxu_dtype = w1x_ref.dtype

    # fc1 + relu: concat is fused away -> two matmuls on the same MXU pass
    # budget (K=state_dim and K=action_dim are tiny), f32 accumulation.
    h = (jnp.dot(x_ref[...].astype(mxu_dtype), w1x_ref[...],
                 preferred_element_type=jnp.float32)
         + jnp.dot(a_ref[...].astype(mxu_dtype), w1a_ref[...],
                   preferred_element_type=jnp.float32))
    h = jnp.maximum(h + b1_ref[...], 0.0)

    # fc2 + relu
    h = jnp.dot(h.astype(mxu_dtype), w2_ref[...],
                preferred_element_type=jnp.float32)
    h = jnp.maximum(h + b2_ref[...], 0.0)

    # fc3 + relu
    h = jnp.dot(h.astype(mxu_dtype), w3_ref[...],
                preferred_element_type=jnp.float32)
    h = jnp.maximum(h + b3_ref[...], 0.0)

    # fc4 (N=1): VPU multiply + lane reduction in f32, then flip the (TB, 1)
    # column to a lane-dense (1, TB) row (XLU; that slot is idle here).
    q = jnp.sum(h * w4row_ref[...], axis=-1, keepdims=True) + b4_ref[0, 0]
    o_ref[...] = jnp.transpose(q).astype(o_ref.dtype)


def critic_forward(x, a, params, *, tb=1024, use_bf16=True):
    """x: [B, state_dim], a: [B, action_dim] -> q: [B, 1]"""
    (w1, b1, w2, b2, w3, b3, w4row, b4) = params
    B, state_dim = x.shape
    action_dim = a.shape[1]
    H = w1.shape[1]
    H2 = w2.shape[1]

    # Split fc1's weight at trace time (free): cat([x,a]) @ w1 == x@w1x + a@w1a.
    w1x, w1a = w1[:state_dim], w1[state_dim:]

    mxu_dtype = jnp.bfloat16 if use_bf16 else w1.dtype
    w1x = w1x.astype(mxu_dtype)
    w1a = w1a.astype(mxu_dtype)
    w2m = w2.astype(mxu_dtype)
    w3m = w3.astype(mxu_dtype)

    # Batch tiling: big tiles (per-step overhead amortized); >= num_cores tiles
    # on v7x so both TensorCores get work; single full-array tile (no padding)
    # when the whole batch fits in one tile on a 1-TC chip / tiny batches.
    nc = _num_tensorcores() if B >= 16 else 1
    n_tiles = max(nc, _cdiv(B, tb))
    if n_tiles <= 1:
        TB = B                       # block == full array: no alignment/pad needed
    else:
        TB = _round_up(_cdiv(B, n_tiles), 8)
    B_pad = _round_up(B, TB)
    G = B_pad // TB

    if B_pad != B:
        pad = ((0, B_pad - B), (0, 0))
        x = jnp.pad(x, pad)
        a = jnp.pad(a, pad)

    resident = lambda shape: pl.BlockSpec(shape, lambda i: (0, 0))

    q_rows = pl.pallas_call(
        critic_kernel,
        out_shape=jax.ShapeDtypeStruct((G, TB), jnp.float32),
        grid=(G,),
        in_specs=[
            pl.BlockSpec((TB, state_dim), lambda i: (i, 0)),     # x  (pipelined)
            pl.BlockSpec((TB, action_dim), lambda i: (i, 0)),    # a  (pipelined)
            resident((state_dim, H)),                            # w1x
            resident((action_dim, H)),                           # w1a
            resident((1, H)),                                    # b1
            resident((H, H2)),                                   # w2
            resident((1, H2)),                                   # b2
            resident((H2, H)),                                   # w3
            resident((1, H)),                                    # b3
            resident((1, H)),                                    # w4 as a row (f32)
            pl.BlockSpec(memory_space=pltpu.MemorySpace.SMEM),   # b4 scalar
        ],
        out_specs=pl.BlockSpec((1, TB), lambda i: (i, 0)),       # lane-dense row
        compiler_params=pltpu.CompilerParams(
            dimension_semantics=("parallel",),
        ),
    )(x, a, w1x, w1a, b1, w2m, b2, w3m, b3, w4row, b4)

    # Row-major (G, TB) flattens to batch order; drop padded rows, shape [B, 1].
    return q_rows.reshape(B_pad, 1)[:B]


def init_params(key, state_dim, action_dim, hidden_dim):
    """Deterministic synthetic init (uniform +-1/sqrt(fan_in), like nn.Linear default)."""
    def linear(k, fan_in, fan_out):
        kw, kb = jax.random.split(k)
        bound = 1.0 / jnp.sqrt(jnp.float32(fan_in))
        w = jax.random.uniform(kw, (fan_in, fan_out), jnp.float32, -bound, bound)
        b = jax.random.uniform(kb, (1, fan_out), jnp.float32, -bound, bound)
        return w, b

    k1, k2, k3, k4 = jax.random.split(key, 4)
    w1, b1 = linear(k1, state_dim + action_dim, hidden_dim)
    w2, b2 = linear(k2, hidden_dim, hidden_dim * 2)
    w3, b3 = linear(k3, hidden_dim * 2, hidden_dim)
    w4, b4 = linear(k4, hidden_dim, 1)
    # fc4 weight as a [1, H] row for the VPU epilogue; its bias as a (1,1) scalar.
    w4row = w4.T                     # [1, hidden_dim]
    b4s = b4.reshape(1, 1)           # [1, 1]
    return (w1, b1, w2, b2, w3, b3, w4row, b4s)


def reference_forward(x, a, params, *, use_bf16=True):
    """Pure-JAX reference with the same per-matmul dtype policy as the kernel."""
    (w1, b1, w2, b2, w3, b3, w4row, b4) = params
    cast = (lambda t: t.astype(jnp.bfloat16)) if use_bf16 else (lambda t: t)
    xa = jnp.concatenate([x, a], axis=1)
    h = jnp.maximum(jnp.dot(cast(xa), cast(w1),
                            preferred_element_type=jnp.float32) + b1, 0.0)
    h = jnp.maximum(jnp.dot(cast(h), cast(w2),
                            preferred_element_type=jnp.float32) + b2, 0.0)
    h = jnp.maximum(jnp.dot(cast(h), cast(w3),
                            preferred_element_type=jnp.float32) + b3, 0.0)
    return jnp.dot(h, w4row.T) + b4      # fc4 stays f32, like the kernel epilogue


if __name__ == "__main__":
    state_dim, action_dim, hidden_dim = 12, 4, 64
    batch = 2

    key = jax.random.PRNGKey(0)
    k_params, k_x, k_a = jax.random.split(key, 3)

    params = init_params(k_params, state_dim, action_dim, hidden_dim)
    x = jax.random.normal(k_x, (batch, state_dim), jnp.float32)
    a = jax.random.normal(k_a, (batch, action_dim), jnp.float32)

    q = critic_forward(x, a, params)
    q = jax.block_until_ready(q)

    q_ref = reference_forward(x, a, params, use_bf16=True)
    assert q.shape == (batch, 1)
    assert jnp.allclose(q, q_ref, atol=1e-3, rtol=1e-3), (q, q_ref)

    print("KERNEL_OK")
</pallas_src>

<mosaic_0001>
module attributes {stable_mosaic.version = 11 : i64} {
  func.func @critic_kernel(%arg0: i32, %arg1: memref<2x12xf32, #tpu.memory_space<vmem>>, %arg2: memref<2x4xf32, #tpu.memory_space<vmem>>, %arg3: memref<12x64xbf16, #tpu.memory_space<vmem>>, %arg4: memref<4x64xbf16, #tpu.memory_space<vmem>>, %arg5: memref<1x64xf32, #tpu.memory_space<vmem>>, %arg6: memref<64x128xbf16, #tpu.memory_space<vmem>>, %arg7: memref<1x128xf32, #tpu.memory_space<vmem>>, %arg8: memref<128x64xbf16, #tpu.memory_space<vmem>>, %arg9: memref<1x64xf32, #tpu.memory_space<vmem>>, %arg10: memref<1x64xf32, #tpu.memory_space<vmem>>, %arg11: memref<1x1xf32, #tpu.memory_space<smem>>, %arg12: memref<1x2xf32, #tpu.memory_space<vmem>>) attributes {dimension_semantics = [#tpu.dimension_semantics<parallel>], iteration_bounds = array<i64: 1>, scalar_prefetch = 0 : i64, scratch_operands = 0 : i64, tpu.core_type = #tpu.core_type<tc>, window_params = [{transform_indices = @transform_0, window_bounds = array<i64: 2, 12>}, {transform_indices = @transform_1, window_bounds = array<i64: 2, 4>}, {pipeline_mode = #tpu.pipeline_mode<synchronous>, transform_indices = @transform_2, window_bounds = array<i64: 12, 64>}, {pipeline_mode = #tpu.pipeline_mode<synchronous>, transform_indices = @transform_3, window_bounds = array<i64: 4, 64>}, {pipeline_mode = #tpu.pipeline_mode<synchronous>, transform_indices = @transform_4, window_bounds = array<i64: 1, 64>}, {pipeline_mode = #tpu.pipeline_mode<synchronous>, transform_indices = @transform_5, window_bounds = array<i64: 64, 128>}, {pipeline_mode = #tpu.pipeline_mode<synchronous>, transform_indices = @transform_6, window_bounds = array<i64: 1, 128>}, {pipeline_mode = #tpu.pipeline_mode<synchronous>, transform_indices = @transform_7, window_bounds = array<i64: 128, 64>}, {pipeline_mode = #tpu.pipeline_mode<synchronous>, transform_indices = @transform_8, window_bounds = array<i64: 1, 64>}, {pipeline_mode = #tpu.pipeline_mode<synchronous>, transform_indices = @transform_9, window_bounds = array<i64: 1, 64>}, {transform_indices = @transform_10, window_bounds = array<i64: 1, 1>}, {transform_indices = @transform_11, window_bounds = array<i64: 1, 2>}]} {
    %c0 = arith.constant 0 : index
    %c0_0 = arith.constant 0 : index
    %0 = vector.load %arg1[%c0, %c0_0] : memref<2x12xf32, #tpu.memory_space<vmem>>, vector<2x12xf32>
    %1 = arith.truncf %0 : vector<2x12xf32> to vector<2x12xbf16>
    %c0_1 = arith.constant 0 : index
    %c0_2 = arith.constant 0 : index
    %2 = vector.load %arg3[%c0_1, %c0_2] : memref<12x64xbf16, #tpu.memory_space<vmem>>, vector<12x64xbf16>
    %cst = arith.constant dense<0.000000e+00> : vector<2x64xf32>
    %3 = tpu.matmul %1, %2, %cst {dimension_numbers = #tpu.dot_dimension_numbers<[1], [0], [0], [1], [0, 0, 1, 1], [], []>} : vector<2x12xbf16>, vector<12x64xbf16>, vector<2x64xf32> -> vector<2x64xf32>
    %c0_3 = arith.constant 0 : index
    %c0_4 = arith.constant 0 : index
    %4 = vector.load %arg2[%c0_3, %c0_4] : memref<2x4xf32, #tpu.memory_space<vmem>>, vector<2x4xf32>
    %5 = arith.truncf %4 : vector<2x4xf32> to vector<2x4xbf16>
    %c0_5 = arith.constant 0 : index
    %c0_6 = arith.constant 0 : index
    %6 = vector.load %arg4[%c0_5, %c0_6] : memref<4x64xbf16, #tpu.memory_space<vmem>>, vector<4x64xbf16>
    %cst_7 = arith.constant dense<0.000000e+00> : vector<2x64xf32>
    %7 = tpu.matmul %5, %6, %cst_7 {dimension_numbers = #tpu.dot_dimension_numbers<[1], [0], [0], [1], [0, 0, 1, 1], [], []>} : vector<2x4xbf16>, vector<4x64xbf16>, vector<2x64xf32> -> vector<2x64xf32>
    %8 = arith.addf %3, %7 : vector<2x64xf32>
    %c0_8 = arith.constant 0 : index
    %c0_9 = arith.constant 0 : index
    %9 = vector.load %arg5[%c0_8, %c0_9] : memref<1x64xf32, #tpu.memory_space<vmem>>, vector<1x64xf32>
    %10 = vector.broadcast %9 : vector<1x64xf32> to vector<2x64xf32>
    %11 = arith.addf %8, %10 : vector<2x64xf32>
    %cst_10 = arith.constant 0.000000e+00 : f32
    %12 = vector.broadcast %cst_10 : f32 to vector<2x64xf32>
    %13 = arith.maximumf %11, %12 : vector<2x64xf32>
    %14 = arith.truncf %13 : vector<2x64xf32> to vector<2x64xbf16>
    %c0_11 = arith.constant 0 : index
    %c0_12 = arith.constant 0 : index
    %15 = vector.load %arg6[%c0_11, %c0_12] : memref<64x128xbf16, #tpu.memory_space<vmem>>, vector<64x128xbf16>
    %cst_13 = arith.constant dense<0.000000e+00> : vector<2x128xf32>
    %16 = tpu.matmul %14, %15, %cst_13 {dimension_numbers = #tpu.dot_dimension_numbers<[1], [0], [0], [1], [0, 0, 1, 1], [], []>} : vector<2x64xbf16>, vector<64x128xbf16>, vector<2x128xf32> -> vector<2x128xf32>
    %c0_14 = arith.constant 0 : index
    %c0_15 = arith.constant 0 : index
    %17 = vector.load %arg7[%c0_14, %c0_15] : memref<1x128xf32, #tpu.memory_space<vmem>>, vector<1x128xf32>
    %18 = vector.broadcast %17 : vector<1x128xf32> to vector<2x128xf32>
    %19 = arith.addf %16, %18 : vector<2x128xf32>
    %cst_16 = arith.constant 0.000000e+00 : f32
    %20 = vector.broadcast %cst_16 : f32 to vector<2x128xf32>
    %21 = arith.maximumf %19, %20 : vector<2x128xf32>
    %22 = arith.truncf %21 : vector<2x128xf32> to vector<2x128xbf16>
    %c0_17 = arith.constant 0 : index
    %c0_18 = arith.constant 0 : index
    %23 = vector.load %arg8[%c0_17, %c0_18] : memref<128x64xbf16, #tpu.memory_space<vmem>>, vector<128x64xbf16>
    %cst_19 = arith.constant dense<0.000000e+00> : vector<2x64xf32>
    %24 = tpu.matmul %22, %23, %cst_19 {dimension_numbers = #tpu.dot_dimension_numbers<[1], [0], [0], [1], [0, 0, 1, 1], [], []>} : vector<2x128xbf16>, vector<128x64xbf16>, vector<2x64xf32> -> vector<2x64xf32>
    %c0_20 = arith.constant 0 : index
    %c0_21 = arith.constant 0 : index
    %25 = vector.load %arg9[%c0_20, %c0_21] : memref<1x64xf32, #tpu.memory_space<vmem>>, vector<1x64xf32>
    %26 = vector.broadcast %25 : vector<1x64xf32> to vector<2x64xf32>
    %27 = arith.addf %24, %26 : vector<2x64xf32>
    %cst_22 = arith.constant 0.000000e+00 : f32
    %28 = vector.broadcast %cst_22 : f32 to vector<2x64xf32>
    %29 = arith.maximumf %27, %28 : vector<2x64xf32>
    %c0_23 = arith.constant 0 : index
    %c0_24 = arith.constant 0 : index
    %30 = vector.load %arg10[%c0_23, %c0_24] : memref<1x64xf32, #tpu.memory_space<vmem>>, vector<1x64xf32>
    %31 = vector.broadcast %30 : vector<1x64xf32> to vector<2x64xf32>
    %32 = arith.mulf %29, %31 : vector<2x64xf32>
    %cst_25 = arith.constant dense<0.000000e+00> : vector<2xf32>
    %33 = vector.multi_reduction <add>, %32, %cst_25 [1] : vector<2x64xf32> to vector<2xf32>
    %34 = vector.shape_cast %33 : vector<2xf32> to vector<2x1xf32>
    %c0_26 = arith.constant 0 : index
    %c0_27 = arith.constant 0 : index
    %35 = memref.load %arg11[%c0_26, %c0_27] : memref<1x1xf32, #tpu.memory_space<smem>>
    %36 = vector.broadcast %35 : f32 to vector<2x1xf32>
    %37 = arith.addf %34, %36 : vector<2x1xf32>
    %38 = tpu.transpose %37, [1, 0] : vector<2x1xf32> -> vector<1x2xf32>
    %c0_28 = arith.constant 0 : index
    %c0_29 = arith.constant 0 : index
    %39 = vector.load %arg12[%c0_28, %c0_29] : memref<1x2xf32, #tpu.memory_space<vmem>>, vector<1x2xf32>
    tpu.vector_store %arg12[%c0_28, %c0_29], %38 {strides = array<i32>} : memref<1x2xf32, #tpu.memory_space<vmem>>, vector<1x2xf32>,
    return
  }
  func.func @transform_0(%arg0: i32) -> (i32, i32) {
    %c0_i32 = arith.constant 0 : i32
    %c0_i32_0 = arith.constant 0 : i32
    return %arg0, %c0_i32 : i32, i32
  }
  func.func @transform_1(%arg0: i32) -> (i32, i32) {
    %c0_i32 = arith.constant 0 : i32
    %c0_i32_0 = arith.constant 0 : i32
    return %arg0, %c0_i32 : i32, i32
  }
  func.func @transform_2(%arg0: i32) -> (i32, i32) {
    %c0_i32 = arith.constant 0 : i32
    %c0_i32_0 = arith.constant 0 : i32
    %c0_i32_1 = arith.constant 0 : i32
    return %c0_i32, %c0_i32_0 : i32, i32
  }
  func.func @transform_3(%arg0: i32) -> (i32, i32) {
    %c0_i32 = arith.constant 0 : i32
    %c0_i32_0 = arith.constant 0 : i32
    %c0_i32_1 = arith.constant 0 : i32
    return %c0_i32, %c0_i32_0 : i32, i32
  }
  func.func @transform_4(%arg0: i32) -> (i32, i32) {
    %c0_i32 = arith.constant 0 : i32
    %c0_i32_0 = arith.constant 0 : i32
    %c0_i32_1 = arith.constant 0 : i32
    return %c0_i32, %c0_i32_0 : i32, i32
  }
  func.func @transform_5(%arg0: i32) -> (i32, i32) {
    %c0_i32 = arith.constant 0 : i32
    %c0_i32_0 = arith.constant 0 : i32
    %c0_i32_1 = arith.constant 0 : i32
    return %c0_i32, %c0_i32_0 : i32, i32
  }
  func.func @transform_6(%arg0: i32) -> (i32, i32) {
    %c0_i32 = arith.constant 0 : i32
    %c0_i32_0 = arith.constant 0 : i32
    %c0_i32_1 = arith.constant 0 : i32
    return %c0_i32, %c0_i32_0 : i32, i32
  }
  func.func @transform_7(%arg0: i32) -> (i32, i32) {
    %c0_i32 = arith.constant 0 : i32
    %c0_i32_0 = arith.constant 0 : i32
    %c0_i32_1 = arith.constant 0 : i32
    return %c0_i32, %c0_i32_0 : i32, i32
  }
  func.func @transform_8(%arg0: i32) -> (i32, i32) {
    %c0_i32 = arith.constant 0 : i32
    %c0_i32_0 = arith.constant 0 : i32
    %c0_i32_1 = arith.constant 0 : i32
    return %c0_i32, %c0_i32_0 : i32, i32
  }
  func.func @transform_9(%arg0: i32) -> (i32, i32) {
    %c0_i32 = arith.constant 0 : i32
    %c0_i32_0 = arith.constant 0 : i32
    %c0_i32_1 = arith.constant 0 : i32
    return %c0_i32, %c0_i32_0 : i32, i32
  }
  func.func @transform_10(%arg0: i32) -> (i32, i32) {
    %c0_i32 = arith.constant 0 : i32
    %c0_i32_0 = arith.constant 0 : i32
    %c0_i32_1 = arith.constant 0 : i32
    return %c0_i32, %c0_i32_0 : i32, i32
  }
  func.func @transform_11(%arg0: i32) -> (i32, i32) {
    %c0_i32 = arith.constant 0 : i32
    %c0_i32_0 = arith.constant 0 : i32
    return %arg0, %c0_i32 : i32, i32
  }
}

</mosaic_0001>

<bundles_post_ra>
// kernel: tpu_custom_call.1
= control target key start
LH: loop header
LB: loop body
LE: loop exit
PB: predicated region body
PF: predicated region fallthrough
CT: control target
= control target key end

     0   :  { %vm52_vm0 = vcmask 1041408   ;;  %vm78_vm1 = vcmask 1045504   ;;  %vm48_vm2 = vcmask 31744   ;;  %s531_s0 = inlined_call_operand.vmem [shape: f32[2,12], index: 0, kind: input, shape index: {}]   ;;  %s532_s1 = inlined_call_operand.vmem [shape: f32[2,4], index: 1, kind: input, shape index: {}]   ;;  %s533_s2 = inlined_call_operand.vmem [shape: bf16[12,64], index: 2, kind: input, shape index: {}]   ;;  %s534_s3 = inlined_call_operand.vmem [shape: bf16[4,64], index: 3, kind: input, shape index: {}]   ;;  %s535_s4 = inlined_call_operand.vmem [shape: f32[1,64], index: 4, kind: input, shape index: {}]   ;;  %s536_s5 = inlined_call_operand.vmem [shape: bf16[64,128], index: 5, kind: input, shape index: {}]   ;;  %s537_s6 = inlined_call_operand.vmem [shape: f32[1,128], index: 6, kind: input, shape index: {}]   ;;  %s538_s7 = inlined_call_operand.vmem [shape: bf16[128,64], index: 7, kind: input, shape index: {}]   ;;  %s539_s8 = inlined_call_operand.vmem [shape: f32[1,64], index: 8, kind: input, shape index: {}]   ;;  %s540_s9 = inlined_call_operand.vmem [shape: f32[1,64], index: 9, kind: input, shape index: {}]   ;;  %s541_s10 = inlined_call_operand.<no memory space> [shape: f32[1,1], index: 10, kind: input, shape index: {}]   ;;  %s542_s11 = inlined_call_operand.hbm [shape: f32[1,2], index: 11, kind: output, shape index: {}]  }
   0x1   :  { %v47_v0 = vld [vmem:[%s534_s3] sm:$0x3]  ;;  %v356_v3 = vld [vmem:[%s533_s2] sm:$0x30]  ;;  %v360_v8 = vld [vmem:[%s536_s5 + $0x18] sm:$0xff] }
   0x2   :  { %v304_v1 = vld [vmem:[%s533_s2] sm:$0xf]  ;;  %v54_v2 = vsel %vm52_vm0, %v47_v0, 0  ;;  %146 = vmatpush.bf16.msra.mxu2 %v360_v8 }
   0x3   :  { %v45_v4 = vld [vmem:[%s532_s1] sm:$0x3]  ;;  %63 = vmatpush.bf16.msra.mxu0 %v54_v2  ;;  %v305_v5 = vor.u32 %v356_v3, %v304_v1 }
   0x4   :  { %v46_v6 = vpack.c.bf16 %v45_v4, %v45_v4  ;;  %v41_v7 = vld [vmem:[%s531_s0] sm:$0x3] }
   0x5   :  { %v80_v9 = vsel %vm78_vm1, %v305_v5, 0  ;;  %v42_v10 = vpack.c.bf16 %v41_v7, %v41_v7 }
   0x6   :  { %17 = vsyncpa [#allocation4], 0  ;;  %89 = vmatpush.bf16.msra.mxu1 %v80_v9  ;;  %301 = vmatmul.msk.bf16.vlgmr.msra.gmra.mxu0 %vm48_vm2, %v46_v6  ;;  %vm74_vm3 = vcmask 97280   ;;  %v359_v11 = vld [vmem:[%s536_s5 + $0x10] sm:$0xff]  ;;  %v358_v12 = vld [vmem:[%s536_s5 + $0x8] sm:$0xff]  ;;  %vm138_vm4 = vcmask 523264   ;;  %v249_v45 = vstv %s541_s10 }
   0x7   :  { %147 = vmatpush.bf16.msra.mxu2 %v359_v11  ;;  %v357_v13 = vld [vmem:[%s536_s5] sm:$0xff]  ;;  %v368_v14 = vld [vmem:[%s538_s7 + $0x38] sm:$0xff]  ;;  %v367_v15 = vld [vmem:[%s538_s7 + $0x30] sm:$0xff]  ;;  %vm244_vm5 = vcmask 517120   ;;  %s292_s14 = sshll.u32 %s542_s11, 4  ;;  %vm283_vm6 = vcmask 8192   ;;  %s293_s14 = int_to_ptr.hbm [resolvable:$true] %s292_s14 }
   0x8   :  { %225 = vmatpush.bf16.msra.mxu3 %v368_v14  ;;  %v366_v16 = vld [vmem:[%s538_s7 + $0x28] sm:$0xff]  ;;  %v365_v17 = vld [vmem:[%s538_s7 + $0x20] sm:$0xff]  ;;  %v364_v18 = vld [vmem:[%s538_s7 + $0x18] sm:$0xff] }
   0x9   :  { %306 = vmatmul.msk.bf16.vlgmr.msra.gmra.mxu1 %vm74_vm3, %v42_v10  ;;  %v363_v19 = vld [vmem:[%s538_s7 + $0x10] sm:$0xff]  ;;  %v371_v21 = vld [vmem:[%s535_s4] ss:$0 sm:$0xff]  ;;  %v362_v29 = vld [vmem:[%s538_s7 + $0x8] sm:$0xff] }
   0xa   :  { %v361_v30 = vld [vmem:[%s538_s7] sm:$0xff] }
   0xb   :  { %148 = vmatpush.bf16.msra.mxu2 %v358_v12  ;;  %v372_v31 = vld [vmem:[%s537_s6] ss:$0 sm:$0xff] }
   0xc   :  { %226 = vmatpush.bf16.msra.mxu3 %v367_v15  ;;  %v373_v37 = vld [vmem:[%s539_s8] ss:$0 sm:$0xff]  ;;  %s401_s8 = smov [#allocation3]  }
   0xd   :  { %v374_v40 = vld [vmem:[%s540_s9] ss:$0 sm:$0xff]  ;;  %s290_s30 = sshll.u32 %s401_s8, 4  ;;  %s291_s30 = int_to_ptr.vmem [resolvable:$true] %s290_s30 }
   0xf   :  { %149 = vmatpush.bf16.msra.mxu2 %v357_v13 }
  0x10   :  { %227 = vmatpush.bf16.msra.mxu3 %v366_v16 }
  0x14   :  { %228 = vmatpush.bf16.msra.mxu3 %v365_v17 }
  0x18   :  { %229 = vmatpush.bf16.msra.mxu3 %v364_v18 }
  0x1c   :  { %230 = vmatpush.bf16.msra.mxu3 %v363_v19 }
  0x20   :  { %231 = vmatpush.bf16.msra.mxu3 %v362_v29 }
  0x24   :  { %232 = vmatpush.bf16.msra.mxu3 %v361_v30 }
  0x83   :  { %v65_v20 = vpop.f32.mrf.mxu0 }
  0x86   :  { %v91_v22 = vpop.f32.mrf.mxu1 }
  0x87   :  { %v92_v23 = vadd.f32 %v91_v22, %v65_v20 }
  0x89   :  { %v99_v24 = vadd.f32 %v371_v21, %v92_v23 }
  0x8b   :  { %v100_v25 = vmax.f32 %v99_v24, 0.0  ;;  %v67_v26 = vpop.f32.mrf.mxu0 }
  0x8d   :  { %v101_v27 = vpack.c.bf16 %v100_v25, %v100_v25 }
  0x8e   :  { %v93_v28 = vpop.f32.mrf.mxu1 }
  0x8f   :  { %323 = vmatmul.msk.bf16.vlgmr.msra.gmra.mxu2 %vm138_vm4, %v101_v27 }
 0x112   :  { %v151_v32 = vpop.f32.mrf.mxu2 }
 0x113   :  { %v152_v33 = vadd.f32 %v372_v31, %v151_v32 }
 0x115   :  { %v155_v34 = vmax.f32 %v152_v33, 0.0 }
 0x117   :  { %v156_v35 = vpack.c.bf16 %v155_v34, %v155_v34 }
 0x119   :  { %233 = vmatmul.bf16.vlgmr.msra.gmra.mxu3 %v156_v35 }
 0x11a   :  { %v153_v36 = vpop.f32.mrf.mxu2 }
 0x19c   :  { %v234_v38 = vpop.f32.mrf.mxu3 }
 0x19d   :  { %v235_v39 = vadd.f32 %v373_v37, %v234_v38 }
 0x19f   :  { %v238_v41 = vmax.f32 %v235_v39, 0.0 }
 0x1a1   :  { %v243_v42 = vmul.f32 %v374_v40, %v238_v41 }
 0x1a3   :  { %v245_v43 = vsel %vm244_vm5, %v243_v42, 0.0 }
 0x1a4   :  { %v236_v44 = vpop.f32.mrf.mxu3  ;;  %246 = vadd.xlane.f32.xlu0 %v245_v43 }
 0x217   :  { %v247_v46 = vpop.xlane.xlu0 %246 }
 0x218   :  { %v250_v47 = vadd.f32 %v249_v45, %v247_v46 }
 0x21a   :  { %251 = vxpose.xlu0.b32.start.end [1/1] (short) (narrow) %v250_v47, 8 }
 0x2be   :  { %v267_v48 = vpop.trf.xlu0 }
 0x2bf   :  { %284 = vst.msk [vmem:[#allocation3] sm:$0x1] %vm283_vm6, %v267_v48 }
 0x2c0   :  { %295 = dma.vmem_to_hbm [thread:$0]  %s291_s30, 16, %s293_s14, [#allocation4]  }
 0x2c1   :  { %399 = dma.done.wait [#allocation4], 16  }
 0x2c2   :  { %400 = vsyncadd [#allocation4], 4294967280 }
 0x2c3   :  { %300 = vsyncpa [#allocation4], 1 }

</bundles_post_ra>
